<compile_context>
chip_gen: v5e
topology: v5e:2x2
jax: 0.10.0
libtpu: 0.0.40
codegen_flags: <defaults>
</compile_context>

<pallas_src>
import jax
import jax.numpy as jnp
from jax.experimental import pallas as pl
from jax.experimental.pallas import tpu as pltpu


def _mlp_kernel(xt_ref, w1_ref, w2_ref, b2_ref, o_ref):
    # ---- Layer 1 (MXU), NN form with bias folded into the contraction:
    #      ht[h, b] = sum_k W1a[h, k] * xT[k, b]   (K = input_dim + 1)
    ht = jax.lax.dot_general(
        w1_ref[...], xt_ref[...],
        dimension_numbers=(((1,), (0,)), ((), ())),
        preferred_element_type=jnp.float32)              # [hidden, TB]
    ht = jnp.maximum(ht, 0.0)                            # ReLU (single VALU pass)

    # ---- Layer 2 (output_dim == 1): VPU multiply + sublane (XLU) reduction.
    logits = jnp.sum(ht * w2_ref[...], axis=0, keepdims=True) + b2_ref[...]  # [1, TB]

    # ---- Numerically-stable sigmoid (never exponentiates a positive arg).
    z = jnp.exp(-jnp.abs(logits))                        # EUP
    inv = 1.0 / (1.0 + z)
    o_ref[...] = jnp.where(logits >= 0.0, inv, z * inv).astype(o_ref.dtype)


def _round_up(n, m):
    return ((n + m - 1) // m) * m


def _choose_block_b(B, *, cap=8192, min_tiles=2):
    """Batch tile: multiple of 128, fitted to B (minimal padding), <= cap rows,
    and >= min_tiles grid steps when the batch is big enough (v7x megacore)."""
    target_tiles = max(pl.cdiv(B, cap), min_tiles)
    block_b = max(_round_up(pl.cdiv(B, target_tiles), 128), 128)
    return block_b


def action_conditioned_ff(x, w1, b1, w2, b2, *, block_b=None):
    """Forward pass.

    x : [B, input_dim]       f32
    w1: [hidden, input_dim]  (PyTorch nn.Linear weight layout)
    b1: [hidden]
    w2: [output_dim=1, hidden]
    b2: [output_dim=1]
    returns [B, 1] f32
    """
    B, input_dim = x.shape
    hidden = w1.shape[0]
    k_aug = input_dim + 1                                  # ones row / bias column

    if block_b is None:
        block_b = _choose_block_b(B)
    num_tiles = pl.cdiv(B, block_b)
    b_pad = num_tiles * block_b

    # x transposed with a ones row appended (bias folded into the matmul).
    xt = jnp.concatenate(
        [x.astype(jnp.float32).T, jnp.ones((1, B), jnp.float32)], axis=0)  # [K+1, B]
    if b_pad != B:
        xt = jnp.pad(xt, ((0, 0), (0, b_pad - B)))   # zero cols, sliced off at the end

    # W1 augmented with b1 as its last column: [hidden, K+1].
    w1a = jnp.concatenate(
        [w1.astype(jnp.float32), b1.reshape(hidden, 1).astype(jnp.float32)], axis=1)
    w2c = w2.reshape(hidden, 1).astype(jnp.float32)
    b2c = b2.reshape(1, 1).astype(jnp.float32)

    flops = 2 * b_pad * hidden * k_aug + 3 * b_pad * hidden  # matmul + relu + layer 2
    bytes_accessed = 4 * (k_aug * b_pad + hidden * k_aug + hidden + 1 + b_pad)

    out = pl.pallas_call(
        _mlp_kernel,
        out_shape=jax.ShapeDtypeStruct((1, b_pad), jnp.float32),
        grid=(num_tiles,),
        in_specs=[
            pl.BlockSpec((k_aug, block_b), lambda i: (0, i)),    # x^T tile (pipelined, lane-dense)
            pl.BlockSpec((hidden, k_aug), lambda i: (0, 0)),     # W1|b1 (resident)
            pl.BlockSpec((hidden, 1), lambda i: (0, 0)),         # W2 column (resident)
            pl.BlockSpec((1, 1), lambda i: (0, 0)),              # b2 (resident)
        ],
        out_specs=pl.BlockSpec((1, block_b), lambda i: (0, i)),  # lane-dense output
        compiler_params=pltpu.CompilerParams(
            dimension_semantics=("parallel",)),
        cost_estimate=pl.CostEstimate(
            flops=flops, transcendentals=b_pad, bytes_accessed=bytes_accessed),
    )(xt, w1a, w2c, b2c)

    return out.reshape(b_pad, 1)[:B]


def _init_params(key, input_dim=6, hidden_dim=200, output_dim=1):
    """PyTorch-style U(-1/sqrt(fan_in), 1/sqrt(fan_in)) init, torch weight layouts."""
    k1, k2, k3, k4 = jax.random.split(key, 4)
    bound1 = 1.0 / jnp.sqrt(jnp.float32(input_dim))
    bound2 = 1.0 / jnp.sqrt(jnp.float32(hidden_dim))
    w1 = jax.random.uniform(k1, (hidden_dim, input_dim), jnp.float32, -bound1, bound1)
    b1 = jax.random.uniform(k2, (hidden_dim,), jnp.float32, -bound1, bound1)
    w2 = jax.random.uniform(k3, (output_dim, hidden_dim), jnp.float32, -bound2, bound2)
    b2 = jax.random.uniform(k4, (output_dim,), jnp.float32, -bound2, bound2)
    return w1, b1, w2, b2


def _reference(x, w1, b1, w2, b2):
    h = jnp.maximum(x @ w1.T + b1, 0.0)
    return jax.nn.sigmoid(h @ w2.T + b2)


# TODO(synk): Action_Conditioned_FF.evaluate() is a host-side eval loop over a
# DataLoader with a loss function — not part of the forward pass, not a kernel.

if __name__ == "__main__":
    key = jax.random.PRNGKey(0)
    kx, kp = jax.random.split(key)

    B, input_dim, hidden_dim, output_dim = 8, 6, 200, 1
    x = jax.random.normal(kx, (B, input_dim), jnp.float32)
    w1, b1, w2, b2 = _init_params(kp, input_dim, hidden_dim, output_dim)

    out = jax.block_until_ready(action_conditioned_ff(x, w1, b1, w2, b2))

    ref = _reference(x, w1, b1, w2, b2)
    assert out.shape == (B, output_dim), out.shape
    assert jnp.allclose(out, ref, atol=1e-5, rtol=1e-5), "mismatch vs reference"

    print("KERNEL_OK")
</pallas_src>

<mosaic_0001>
module attributes {stable_mosaic.version = 11 : i64} {
  func.func @_mlp_kernel(%arg0: i32, %arg1: memref<7x128xf32, #tpu.memory_space<vmem>>, %arg2: memref<200x7xf32, #tpu.memory_space<vmem>>, %arg3: memref<200x1xf32, #tpu.memory_space<vmem>>, %arg4: memref<1x1xf32, #tpu.memory_space<vmem>>, %arg5: memref<1x128xf32, #tpu.memory_space<vmem>>) attributes {dimension_semantics = [#tpu.dimension_semantics<parallel>], iteration_bounds = array<i64: 1>, scalar_prefetch = 0 : i64, scratch_operands = 0 : i64, tpu.core_type = #tpu.core_type<tc>, window_params = [{transform_indices = @transform_0, window_bounds = array<i64: 7, 128>}, {pipeline_mode = #tpu.pipeline_mode<synchronous>, transform_indices = @transform_1, window_bounds = array<i64: 200, 7>}, {pipeline_mode = #tpu.pipeline_mode<synchronous>, transform_indices = @transform_2, window_bounds = array<i64: 200, 1>}, {pipeline_mode = #tpu.pipeline_mode<synchronous>, transform_indices = @transform_3, window_bounds = array<i64: 1, 1>}, {transform_indices = @transform_4, window_bounds = array<i64: 1, 128>}]} {
    %c0 = arith.constant 0 : index
    %c0_0 = arith.constant 0 : index
    %0 = vector.load %arg2[%c0, %c0_0] : memref<200x7xf32, #tpu.memory_space<vmem>>, vector<200x7xf32>
    %c0_1 = arith.constant 0 : index
    %c0_2 = arith.constant 0 : index
    %1 = vector.load %arg1[%c0_1, %c0_2] : memref<7x128xf32, #tpu.memory_space<vmem>>, vector<7x128xf32>
    %cst = arith.constant dense<0.000000e+00> : vector<200x128xf32>
    %2 = tpu.matmul %0, %1, %cst {dimension_numbers = #tpu.dot_dimension_numbers<[1], [0], [0], [1], [0, 0, 1, 1], [], []>} : vector<200x7xf32>, vector<7x128xf32>, vector<200x128xf32> -> vector<200x128xf32>
    %cst_3 = arith.constant 0.000000e+00 : f32
    %3 = vector.broadcast %cst_3 : f32 to vector<200x128xf32>
    %4 = arith.maximumf %2, %3 : vector<200x128xf32>
    %c0_4 = arith.constant 0 : index
    %c0_5 = arith.constant 0 : index
    %5 = vector.load %arg3[%c0_4, %c0_5] : memref<200x1xf32, #tpu.memory_space<vmem>>, vector<200x1xf32>
    %6 = vector.broadcast %5 : vector<200x1xf32> to vector<200x128xf32>
    %7 = arith.mulf %4, %6 : vector<200x128xf32>
    %cst_6 = arith.constant dense<0.000000e+00> : vector<128xf32>
    %8 = vector.multi_reduction <add>, %7, %cst_6 [0] : vector<200x128xf32> to vector<128xf32>
    %9 = vector.shape_cast %8 : vector<128xf32> to vector<1x128xf32>
    %c0_7 = arith.constant 0 : index
    %c0_8 = arith.constant 0 : index
    %10 = vector.load %arg4[%c0_7, %c0_8] : memref<1x1xf32, #tpu.memory_space<vmem>>, vector<1x1xf32>
    %11 = vector.broadcast %10 : vector<1x1xf32> to vector<1x128xf32>
    %12 = arith.addf %9, %11 : vector<1x128xf32>
    %13 = math.absf %12 : vector<1x128xf32>
    %cst_9 = arith.constant 0.000000e+00 : f32
    %14 = vector.broadcast %cst_9 : f32 to vector<1x128xf32>
    %15 = arith.subf %14, %13 : vector<1x128xf32>
    %16 = math.exp %15 : vector<1x128xf32>
    %cst_10 = arith.constant 1.000000e+00 : f32
    %17 = vector.broadcast %cst_10 : f32 to vector<1x128xf32>
    %18 = arith.addf %17, %16 : vector<1x128xf32>
    %cst_11 = arith.constant 1.000000e+00 : f32
    %19 = vector.broadcast %cst_11 : f32 to vector<1x128xf32>
    %20 = arith.divf %19, %18 : vector<1x128xf32>
    %cst_12 = arith.constant 0.000000e+00 : f32
    %21 = vector.broadcast %cst_12 : f32 to vector<1x128xf32>
    %22 = arith.cmpf oge, %12, %21 : vector<1x128xf32>
    %23 = arith.mulf %16, %20 : vector<1x128xf32>
    %24 = arith.select %22, %20, %23 : vector<1x128xi1>, vector<1x128xf32>
    %c0_13 = arith.constant 0 : index
    %c0_14 = arith.constant 0 : index
    %25 = vector.load %arg5[%c0_13, %c0_14] : memref<1x128xf32, #tpu.memory_space<vmem>>, vector<1x128xf32>
    tpu.vector_store %arg5[%c0_13, %c0_14], %24 {strides = array<i32>} : memref<1x128xf32, #tpu.memory_space<vmem>>, vector<1x128xf32>,
    return
  }
  func.func @transform_0(%arg0: i32) -> (i32, i32) {
    %c0_i32 = arith.constant 0 : i32
    %c0_i32_0 = arith.constant 0 : i32
    return %c0_i32, %arg0 : i32, i32
  }
  func.func @transform_1(%arg0: i32) -> (i32, i32) {
    %c0_i32 = arith.constant 0 : i32
    %c0_i32_0 = arith.constant 0 : i32
    %c0_i32_1 = arith.constant 0 : i32
    return %c0_i32, %c0_i32_0 : i32, i32
  }
  func.func @transform_2(%arg0: i32) -> (i32, i32) {
    %c0_i32 = arith.constant 0 : i32
    %c0_i32_0 = arith.constant 0 : i32
    %c0_i32_1 = arith.constant 0 : i32
    return %c0_i32, %c0_i32_0 : i32, i32
  }
  func.func @transform_3(%arg0: i32) -> (i32, i32) {
    %c0_i32 = arith.constant 0 : i32
    %c0_i32_0 = arith.constant 0 : i32
    %c0_i32_1 = arith.constant 0 : i32
    return %c0_i32, %c0_i32_0 : i32, i32
  }
  func.func @transform_4(%arg0: i32) -> (i32, i32) {
    %c0_i32 = arith.constant 0 : i32
    %c0_i32_0 = arith.constant 0 : i32
    return %c0_i32, %arg0 : i32, i32
  }
}

</mosaic_0001>

<bundles_post_ra>
// kernel: tpu_custom_call.1
= control target key start
LH: loop header
LB: loop body
LE: loop exit
PB: predicated region body
PF: predicated region fallthrough
CT: control target
= control target key end

     0   :  { %s787_s0 = inlined_call_operand.vmem [shape: f32[7,128], index: 0, kind: input, shape index: {}]   ;;  %s788_s1 = inlined_call_operand.vmem [shape: f32[200,7], index: 1, kind: input, shape index: {}]   ;;  %s789_s2 = inlined_call_operand.vmem [shape: f32[200,1], index: 2, kind: input, shape index: {}]   ;;  %s790_s3 = inlined_call_operand.<no memory space> [shape: f32[1,1], index: 3, kind: input, shape index: {}]   ;;  %s791_s4 = inlined_call_operand.hbm [shape: f32[1,128], index: 4, kind: output, shape index: {}]  }
   0x1   :  { %v9_v0 = vstv %s790_s3 }
   0x2   :  { %10 = vst [vmem:[#allocation2] sm:$0x1] %v9_v0 }
   0x3   :  { %v45_v1 = vld [vmem:[%s787_s0] sm:$0x7f]  ;;  %vm122_vm0 = vcmask 1046528   ;;  %v245_v2 = vld [vmem:[%s789_s2 + $0x10] sm:$0xff]  ;;  %v560_v3 = vmov 0   ;;  %vm46_vm1 = vcmask 56320  }
   0x4   :  { %528 = vset.pattern.permute.xlu1 %v560_v3  ;;  %527 = vset.pattern.permute.xlu0 %v560_v3  ;;  %v243_v4 = vld [vmem:[%s789_s2] sm:$0xff]  ;;  %v27_v6 = vld [vmem:[%s788_s1 + $0x38] sm:$0xff]  ;;  %v34_v7 = vld [vmem:[%s788_s1 + $0x70] sm:$0xff] }
   0x5   :  { %v20_v5 = vld [vmem:[%s788_s1] sm:$0xff]  ;;  %496 = vmatpush.msk.msra.mxu0 %vm122_vm0, %v45_v1  ;;  %522 = vmatpush.msk.msra.mxu1 %vm122_vm0, %v45_v1  ;;  %v41_v8 = vld [vmem:[%s788_s1 + $0xa8] sm:$0xff]  ;;  %v246_v10 = vld [vmem:[%s789_s2 + $0x18] sm:$0xff] }
   0x6   :  { %523 = vmatpush.msk.msra.mxu2 %vm122_vm0, %v45_v1  ;;  %280 = vperm.xlu1 %528, %v245_v2   ;;  %v247_v9 = vld [vmem:[%s789_s2 + $0x20] sm:$0xff]  ;;  %v244_v11 = vld [vmem:[%s789_s2 + $0x8] sm:$0xff]  ;;  %v35_v14 = vld [vmem:[%s788_s1 + $0x78] sm:$0xff] }
   0x7   :  { %270 = vperm.xlu0 %527, %v243_v4   ;;  %497 = vmatmul.msk.f32.vlgmr.msra.gmra.mxu0 %vm46_vm1, %v20_v5  ;;  %v21_v12 = vld [vmem:[%s788_s1 + $0x8] sm:$0xff]  ;;  %v28_v13 = vld [vmem:[%s788_s1 + $0x40] sm:$0xff]  ;;  %v42_v15 = vld [vmem:[%s788_s1 + $0xb0] sm:$0xff] }
   0x8   :  { %504 = vmatmul.msk.f32.vlgmr.msra.gmra.mxu1 %vm46_vm1, %v27_v6  ;;  %511 = vmatmul.msk.f32.vlgmr.msra.gmra.mxu2 %vm46_vm1, %v34_v7  ;;  %v248_v16 = vld [vmem:[%s789_s2 + $0x28] sm:$0xff] }
   0x9   :  { %524 = vmatpush.msk.msra.mxu3 %vm122_vm0, %v45_v1  ;;  %529 = vset.pattern.permute.xlu2 %v560_v3 }
   0xa   :  { %518 = vmatmul.msk.f32.vlgmr.msra.gmra.mxu3 %vm46_vm1, %v41_v8  ;;  %290 = vperm.xlu2 %529, %v247_v9  }
   0xe   :  { %285 = vperm.xlu1 %528, %v246_v10  }
   0xf   :  { %275 = vperm.xlu0 %527, %v244_v11   ;;  %498 = vmatmul.msk.f32.gmra.mxu0 %vm46_vm1, %v21_v12 }
  0x10   :  { %505 = vmatmul.msk.f32.gmra.mxu1 %vm46_vm1, %v28_v13  ;;  %512 = vmatmul.msk.f32.gmra.mxu2 %vm46_vm1, %v35_v14 }
  0x11   :  { %11 = vsyncpa [#allocation4], 0  ;;  %v250_v17 = vld [vmem:[%s789_s2 + $0x38] sm:$0xff]  ;;  %v249_v18 = vld [vmem:[%s789_s2 + $0x30] sm:$0xff]  ;;  %s487_s9 = sshll.u32 %s791_s4, 4  ;;  %s488_s9 = int_to_ptr.hbm [resolvable:$true] %s487_s9 }
  0x12   :  { %519 = vmatmul.msk.f32.gmra.mxu3 %vm46_vm1, %v42_v15  ;;  %295 = vperm.xlu2 %529, %v248_v16   ;;  %v22_v19 = vld [vmem:[%s788_s1 + $0x10] sm:$0xff]  ;;  %v29_v20 = vld [vmem:[%s788_s1 + $0x48] sm:$0xff]  ;;  %v36_v21 = vld [vmem:[%s788_s1 + $0x80] sm:$0xff] }
  0x13   :  { %v43_v22 = vld [vmem:[%s788_s1 + $0xb8] sm:$0xff]  ;;  %v251_v23 = vld [vmem:[%s789_s2 + $0x40] sm:$0xff]  ;;  %v253_v24 = vld [vmem:[%s789_s2 + $0x50] sm:$0xff] }
  0x14   :  { %v252_v25 = vld [vmem:[%s789_s2 + $0x48] sm:$0xff]  ;;  %v23_v26 = vld [vmem:[%s788_s1 + $0x18] sm:$0xff]  ;;  %v30_v27 = vld [vmem:[%s788_s1 + $0x50] sm:$0xff] }
  0x15   :  { %v37_v28 = vld [vmem:[%s788_s1 + $0x88] sm:$0xff]  ;;  %v254_v29 = vld [vmem:[%s789_s2 + $0x58] sm:$0xff]  ;;  %v44_v30 = vld [vmem:[%s788_s1 + $0xc0] sm:$0xff] }
  0x16   :  { %305 = vperm.xlu1 %528, %v250_v17   ;;  %v256_v31 = vld [vmem:[%s789_s2 + $0x68] sm:$0xff]  ;;  %v255_v32 = vld [vmem:[%s789_s2 + $0x60] sm:$0xff]  ;;  %v31_v34 = vld [vmem:[%s788_s1 + $0x58] sm:$0xff] }
  0x17   :  { %300 = vperm.xlu0 %527, %v249_v18   ;;  %499 = vmatmul.msk.f32.gmra.mxu0 %vm46_vm1, %v22_v19  ;;  %v24_v33 = vld [vmem:[%s788_s1 + $0x20] sm:$0xff]  ;;  %v38_v35 = vld [vmem:[%s788_s1 + $0x90] sm:$0xff]  ;;  %v258_v38 = vld [vmem:[%s789_s2 + $0x78] sm:$0xff] }
  0x18   :  { %506 = vmatmul.msk.f32.gmra.mxu1 %vm46_vm1, %v29_v20  ;;  %513 = vmatmul.msk.f32.gmra.mxu2 %vm46_vm1, %v36_v21  ;;  %v257_v36 = vld [vmem:[%s789_s2 + $0x70] sm:$0xff]  ;;  %v259_v37 = vld [vmem:[%s789_s2 + $0x80] sm:$0xff]  ;;  %v25_v39 = vld [vmem:[%s788_s1 + $0x28] sm:$0xff] }
  0x19   :  { %v32_v40 = vld [vmem:[%s788_s1 + $0x60] sm:$0xff]  ;;  %v39_v41 = vld [vmem:[%s788_s1 + $0x98] sm:$0xff]  ;;  %v260_v42 = vld [vmem:[%s789_s2 + $0x88] sm:$0xff] }
  0x1a   :  { %520 = vmatmul.msk.f32.gmra.mxu3 %vm46_vm1, %v43_v22  ;;  %310 = vperm.xlu2 %529, %v251_v23   ;;  %v262_v43 = vld [vmem:[%s789_s2 + $0x98] sm:$0xff]  ;;  %v261_v44 = vld [vmem:[%s789_s2 + $0x90] sm:$0xff]  ;;  %v33_v46 = vld [vmem:[%s788_s1 + $0x68] sm:$0xff] }
  0x1b   :  { %v26_v45 = vld [vmem:[%s788_s1 + $0x30] sm:$0xff]  ;;  %v40_v47 = vld [vmem:[%s788_s1 + $0xa0] sm:$0xff]  ;;  %v264_v50 = vld [vmem:[%s789_s2 + $0xa8] sm:$0xff] }
  0x1c   :  { %v263_v48 = vld [vmem:[%s789_s2 + $0xa0] sm:$0xff]  ;;  %v265_v49 = vld [vmem:[%s789_s2 + $0xb0] sm:$0xff]  ;;  %v266_v51 = vld [vmem:[%s789_s2 + $0xb8] sm:$0xff] }
  0x1d   :  { %v448_v52 = vld [vmem:[#allocation2] sm:$0x1] }
  0x1e   :  { %320 = vperm.xlu1 %528, %v253_v24   ;;  %v267_v53 = vld [vmem:[%s789_s2 + $0xc0] sm:$0xff]  ;;  %s561_s2 = smov [#allocation3]  }
  0x1f   :  { %315 = vperm.xlu0 %527, %v252_v25   ;;  %500 = vmatmul.msk.f32.gmra.mxu0 %vm46_vm1, %v23_v26  ;;  %s485_s6 = sshll.u32 %s561_s2, 4  ;;  %s486_s6 = int_to_ptr.vmem [resolvable:$true] %s485_s6 }
  0x20   :  { %507 = vmatmul.msk.f32.gmra.mxu1 %vm46_vm1, %v30_v27  ;;  %514 = vmatmul.msk.f32.gmra.mxu2 %vm46_vm1, %v37_v28 }
  0x22   :  { %325 = vperm.xlu2 %529, %v254_v29   ;;  %521 = vmatmul.msk.f32.gmra.mxu3 %vm46_vm1, %v44_v30 }
  0x26   :  { %335 = vperm.xlu1 %528, %v256_v31  }
  0x27   :  { %330 = vperm.xlu0 %527, %v255_v32   ;;  %501 = vmatmul.msk.f32.gmra.mxu0 %vm46_vm1, %v24_v33 }
  0x28   :  { %508 = vmatmul.msk.f32.gmra.mxu1 %vm46_vm1, %v31_v34  ;;  %515 = vmatmul.msk.f32.gmra.mxu2 %vm46_vm1, %v38_v35 }
  0x2a   :  { %340 = vperm.xlu2 %529, %v257_v36  }
  0x2e   :  { %350 = vperm.xlu1 %528, %v259_v37  }
  0x2f   :  { %345 = vperm.xlu0 %527, %v258_v38   ;;  %502 = vmatmul.msk.f32.gmra.mxu0 %vm46_vm1, %v25_v39 }
  0x30   :  { %509 = vmatmul.msk.f32.gmra.mxu1 %vm46_vm1, %v32_v40  ;;  %516 = vmatmul.msk.f32.gmra.mxu2 %vm46_vm1, %v39_v41 }
  0x32   :  { %355 = vperm.xlu2 %529, %v260_v42  }
  0x36   :  { %365 = vperm.xlu1 %528, %v262_v43  }
  0x37   :  { %360 = vperm.xlu0 %527, %v261_v44   ;;  %503 = vmatmul.msk.f32.gmra.mxu0 %vm46_vm1, %v26_v45 }
  0x38   :  { %510 = vmatmul.msk.f32.gmra.mxu1 %vm46_vm1, %v33_v46  ;;  %517 = vmatmul.msk.f32.gmra.mxu2 %vm46_vm1, %v40_v47 }
  0x3a   :  { %370 = vperm.xlu2 %529, %v263_v48  }
  0x3e   :  { %380 = vperm.xlu1 %528, %v265_v49  }
  0x3f   :  { %375 = vperm.xlu0 %527, %v264_v50  }
  0x42   :  { %385 = vperm.xlu2 %529, %v266_v51  }
  0x46   :  { %451 = vperm.xlu1 %528, %v448_v52  }
  0x47   :  { %390 = vperm.xlu0 %527, %v267_v53  }
  0x64   :  { %v291_v60 = vpop.permute.xlu2 %290 }
  0x6c   :  { %v296_v2 = vpop.permute.xlu2 %295 }
  0x74   :  { %v311_v8 = vpop.permute.xlu2 %310 }
  0x78   :  { %v281_v59 = vpop.permute.xlu1 %280 }
  0x79   :  { %v271_v56 = vpop.permute.xlu0 %270 }
  0x7c   :  { %v326_v20 = vpop.permute.xlu2 %325 }
  0x80   :  { %v286_v1 = vpop.permute.xlu1 %285 }
  0x81   :  { %v276_v62 = vpop.permute.xlu0 %275 }
  0x84   :  { %v143_v54 = vpop.f32.mrf.mxu0  ;;  %v341_v39 = vpop.permute.xlu2 %340 }
  0x85   :  { %v164_v55 = vpop.f32.mrf.mxu1  ;;  %v218_v13 = vmax.f32 %v143_v54, 0.0 }
  0x86   :  { %v225_v35 = vmax.f32 %v164_v55, 0.0 }
  0x87   :  { %v393_v21 = vmul.f32 %v271_v56, %v218_v13 }
  0x88   :  { %v306_v7 = vpop.permute.xlu1 %305 }
  0x89   :  { %v301_v4 = vpop.permute.xlu0 %300  ;;  %v400_v45 = vmul.f32 %v306_v7, %v225_v35 }
  0x8b   :  { %v772_v61 = vpop.f32.mrf.mxu2 }
  0x8c   :  { %v146_v57 = vpop.f32.mrf.mxu0 }
  0x8d   :  { %v167_v58 = vpop.f32.mrf.mxu1  ;;  %v219_v12 = vmax.f32 %v146_v57, 0.0  ;;  %v206_v43 = vpop.f32.mrf.mxu3 }
  0x8e   :  { %v226_v40 = vmax.f32 %v167_v58, 0.0  ;;  %v356_v58 = vpop.permute.xlu2 %355 }
  0x8f   :  { %v394_v16 = vmul.f32 %v276_v62, %v219_v12 }
  0x90   :  { %v321_v18 = vpop.permute.xlu1 %320  ;;  %v401_v49 = vmul.f32 %v311_v8, %v226_v40 }
  0x91   :  { %v316_v11 = vpop.permute.xlu0 %315  ;;  %v418_v25 = vadd.f32 %v394_v16, %v393_v21 }
  0x93   :  { %v774_v3 = vpop.f32.mrf.mxu2 }
  0x94   :  { %v149_v63 = vpop.f32.mrf.mxu0  ;;  %v233_v8 = vmax.f32 %v774_v3, 0.0 }
  0x95   :  { %v170_v0 = vpop.f32.mrf.mxu1  ;;  %v220_v14 = vmax.f32 %v149_v63, 0.0 }
  0x96   :  { %v227_v46 = vmax.f32 %v170_v0, 0.0  ;;  %v232_v0 = vmax.f32 %v772_v61, 0.0 }
  0x97   :  { %v395_v22 = vmul.f32 %v281_v59, %v220_v14 }
  0x98   :  { %v336_v38 = vpop.permute.xlu1 %335  ;;  %v402_v52 = vmul.f32 %v316_v11, %v227_v46  ;;  %v407_v12 = vmul.f32 %v341_v39, %v232_v0 }
  0x99   :  { %v331_v28 = vpop.permute.xlu0 %330  ;;  %v419_v29 = vadd.f32 %v418_v25, %v395_v22 }
  0x9b   :  { %v776_v9 = vpop.f32.mrf.mxu2 }
  0x9c   :  { %v152_v5 = vpop.f32.mrf.mxu0  ;;  %v234_v13 = vmax.f32 %v776_v9, 0.0  ;;  %v239_v9 = vmax.f32 %v206_v43, 0.0 }
  0x9d   :  { %v173_v6 = vpop.f32.mrf.mxu1  ;;  %v221_v17 = vmax.f32 %v152_v5, 0.0 }
  0x9e   :  { %v228_v50 = vmax.f32 %v173_v6, 0.0 }
  0x9f   :  { %v396_v26 = vmul.f32 %v286_v1, %v221_v17 }
  0xa0   :  { %v403_v56 = vmul.f32 %v321_v18, %v228_v50 }
  0xa1   :  { %v420_v31 = vadd.f32 %v419_v29, %v396_v26  ;;  %v346_v48 = vpop.permute.xlu0 %345 }
  0xa3   :  { %v778_v24 = vpop.f32.mrf.mxu2 }
  0xa4   :  { %v155_v10 = vpop.f32.mrf.mxu0  ;;  %v235_v16 = vmax.f32 %v778_v24, 0.0 }
  0xa5   :  { %v176_v15 = vpop.f32.mrf.mxu1  ;;  %v222_v23 = vmax.f32 %v155_v10, 0.0 }
  0xa6   :  { %v229_v53 = vmax.f32 %v176_v15, 0.0  ;;  %v408_v15 = vmul.f32 %v346_v48, %v233_v8  ;;  %v410_v25 = vmul.f32 %v356_v58, %v235_v16 }
  0xa7   :  { %v397_v30 = vmul.f32 %v291_v60, %v222_v23  ;;  %v351_v60 = vpop.permute.xlu1 %350 }
  0xa8   :  { %v404_v62 = vmul.f32 %v326_v20, %v229_v53  ;;  %v409_v20 = vmul.f32 %v351_v60, %v234_v13 }
  0xa9   :  { %v421_v36 = vadd.f32 %v420_v31, %v397_v30  ;;  %v361_v6 = vpop.permute.xlu0 %360 }
  0xab   :  { %v197_v44 = vpop.f32.mrf.mxu2 }
  0xac   :  { %v158_v19 = vpop.f32.mrf.mxu0  ;;  %v236_v21 = vmax.f32 %v197_v44, 0.0 }
  0xad   :  { %v223_v27 = vmax.f32 %v158_v19, 0.0  ;;  %v179_v33 = vpop.f32.mrf.mxu1  ;;  %v371_v19 = vpop.permute.xlu2 %370 }
  0xae   :  { %v230_v57 = vmax.f32 %v179_v33, 0.0 }
  0xaf   :  { %v398_v32 = vmul.f32 %v296_v2, %v223_v27  ;;  %v209_v2 = vpop.f32.mrf.mxu3  ;;  %v366_v18 = vpop.permute.xlu1 %365 }
  0xb0   :  { %v405_v5 = vmul.f32 %v331_v28, %v230_v57  ;;  %v411_v28 = vmul.f32 %v361_v6, %v236_v21  ;;  %v240_v33 = vmax.f32 %v209_v2, 0.0 }
  0xb1   :  { %v422_v41 = vadd.f32 %v421_v36, %v398_v32  ;;  %v376_v27 = vpop.permute.xlu0 %375 }
  0xb4   :  { %v161_v34 = vpop.f32.mrf.mxu0 }
  0xb5   :  { %v224_v37 = vmax.f32 %v161_v34, 0.0  ;;  %v182_v55 = vpop.f32.mrf.mxu1  ;;  %v386_v40 = vpop.permute.xlu2 %385 }
  0xb6   :  { %v231_v63 = vmax.f32 %v182_v55, 0.0 }
  0xb7   :  { %v399_v42 = vmul.f32 %v301_v4, %v224_v37  ;;  %v200_v4 = vpop.f32.mrf.mxu2  ;;  %v212_v22 = vpop.f32.mrf.mxu3 }
  0xb8   :  { %v406_v10 = vmul.f32 %v336_v38, %v231_v63  ;;  %v237_v26 = vmax.f32 %v200_v4, 0.0  ;;  %v381_v35 = vpop.permute.xlu1 %380  ;;  %v241_v37 = vmax.f32 %v212_v22, 0.0  ;;  %v414_v38 = vmul.f32 %v376_v27, %v239_v9 }
  0xb9   :  { %v423_v47 = vadd.f32 %v422_v41, %v399_v42  ;;  %v415_v41 = vmul.f32 %v381_v35, %v240_v33 }
  0xba   :  { %v412_v31 = vmul.f32 %v366_v18, %v237_v26  ;;  %v416_v46 = vmul.f32 %v386_v40, %v241_v37 }
  0xbb   :  { %v424_v51 = vadd.f32 %v423_v47, %v400_v45  ;;  %v391_v45 = vpop.permute.xlu0 %390 }
  0xbd   :  { %v425_v54 = vadd.f32 %v424_v51, %v401_v49 }
  0xbf   :  { %v426_v59 = vadd.f32 %v425_v54, %v402_v52  ;;  %v203_v23 = vpop.f32.mrf.mxu2  ;;  %v215_v36 = vpop.f32.mrf.mxu3 }
  0xc0   :  { %v238_v29 = vmax.f32 %v203_v23, 0.0  ;;  %v242_v42 = vmax.f32 %v215_v36, 0.0  ;;  %v452_v54 = vpop.permute.xlu1 %451 }
  0xc1   :  { %v427_v1 = vadd.f32 %v426_v59, %v403_v56  ;;  %v454_v56 = vperm.slane %v452_v54, 0 }
  0xc2   :  { %v413_v24 = vmul.f32 %v371_v19, %v238_v29  ;;  %v417_v48 = vmul.f32 %v391_v45, %v242_v42 }
  0xc3   :  { %v428_v7 = vadd.f32 %v427_v1, %v404_v62 }
  0xc5   :  { %v429_v11 = vadd.f32 %v428_v7, %v405_v5 }
  0xc7   :  { %v430_v14 = vadd.f32 %v429_v11, %v406_v10 }
  0xc9   :  { %v431_v17 = vadd.f32 %v430_v14, %v407_v12 }
  0xcb   :  { %v432_v61 = vadd.f32 %v431_v17, %v408_v15 }
  0xcd   :  { %v433_v3 = vadd.f32 %v432_v61, %v409_v20 }
  0xcf   :  { %v434_v30 = vadd.f32 %v433_v3, %v410_v25 }
  0xd1   :  { %v435_v32 = vadd.f32 %v434_v30, %v411_v28 }
  0xd3   :  { %v436_v34 = vadd.f32 %v435_v32, %v412_v31 }
  0xd5   :  { %v437_v39 = vadd.f32 %v436_v34, %v413_v24 }
  0xd7   :  { %v438_v44 = vadd.f32 %v437_v39, %v414_v38 }
  0xd9   :  { %v439_v47 = vadd.f32 %v438_v44, %v415_v41 }
  0xdb   :  { %v440_v49 = vadd.f32 %v439_v47, %v416_v46 }
  0xdd   :  { %v441_v43 = vadd.f32 %v440_v49, %v417_v48 }
  0xdf   :  { %v442_v50 = vrot.slane %v441_v43, 4 }
  0xe1   :  { %v443_v51 = vadd.f32 %v442_v50, %v441_v43 }
  0xe3   :  { %v444_v52 = vrot.slane %v443_v51, 2 }
  0xe5   :  { %v445_v53 = vadd.f32 %v444_v52, %v443_v51 }
  0xe7   :  { %v446_v55 = vrot.slane %v445_v53, 1 }
  0xe9   :  { %v447_v57 = vadd.f32 %v446_v55, %v445_v53 }
  0xeb   :  { %v455_v59 = vadd.f32 %v454_v56, %v447_v57 }
  0xed   :  { %v456_v60 = vand.u32 2147483647, %v455_v59  ;;  %vm476_vm6 = vcmp.ge.f32.partialorder %v455_v59, 0.0 }
  0xef   :  { %v457_v58 = vsub.f32 0.0, %v456_v60 }
  0xf1   :  { %v458_v62 = vmul.f32 1.442695, %v457_v58 }
  0xf3   :  { %530 = vpow2.f32 %v458_v62 }
  0xf9   :  { %v531_v63 = vpop.eup %530 }
  0xfa   :  { %v460_v1 = vadd.f32 1.0, %v531_v63 }
  0xfc   :  { %532 = vrcp.f32 %v460_v1  ;;  %v472_v5 = vand.u32 2147483648, %v460_v1  ;;  %v470_v6 = vand.u32 2147483647, %v460_v1  ;;  %vm466_vm3 = vweird.f32 %v460_v1 }
  0xfe   :  { %v473_v10 = vor.u32 1.1754944e-38, %v472_v5  ;;  %vm471_vm5 = vcmp.eq.f32.partialorder %v470_v6, 8.507059e+37 }
 0x102   :  { %v533_v2 = vpop.eup %532 }
 0x103   :  { %v462_v4 = vmul.f32 %v533_v2, %v460_v1  ;;  %vm467_vm2 = vweird.f32 %v533_v2 }
 0x104   :  { %vm468_vm4 = vmor %vm466_vm3, %vm467_vm2 }
 0x105   :  { %v463_v0 = vsub.f32 1.0, %v462_v4 }
 0x107   :  { %v464_v7 = vmul.f32 %v533_v2, %v463_v0 }
 0x109   :  { %v465_v8 = vadd.f32 %v533_v2, %v464_v7 }
 0x10b   :  { %v469_v11 = vsel %vm468_vm4, %v533_v2, %v465_v8 }
 0x10c   :  { %v474_v12 = vsel %vm471_vm5, %v473_v10, %v469_v11 }
 0x10d   :  { %v477_v13 = vmul.f32 %v531_v63, %v474_v12 }
 0x10f   :  { %v478_v14 = vsel %vm476_vm6, %v474_v12, %v477_v13 }
 0x110   :  { %479 = vst [vmem:[#allocation3] sm:$0x1] %v478_v14 }
 0x111   :  { %490 = dma.vmem_to_hbm [thread:$0]  %s486_s6, 16, %s488_s9, [#allocation4]  }
 0x112   :  { %558 = dma.done.wait [#allocation4], 16  }
 0x113   :  { %559 = vsyncadd [#allocation4], 4294967280 }
 0x114   :  { %495 = vsyncpa [#allocation4], 1 }

</bundles_post_ra>
